<compile_context>
chip_gen: v6e
topology: v6e:2x2x1
jax: 0.10.0
libtpu: 0.0.40
codegen_flags: <defaults>
</compile_context>

<pallas_src>
import math
import functools

import jax
import jax.numpy as jnp
from jax.experimental import pallas as pl
from jax.experimental.pallas import tpu as pltpu

_VMEM_LIMIT = 32 * 1024 * 1024  # explicit scoped-VMEM budget (safe on v5e/v6e/v7x)


def _round_up(x, m):
    return ((x + m - 1) // m) * m


def _pick_tile(dim, align, max_tile):
    """Returns (tile, padded_dim) with tile % align == 0 and padded_dim % tile == 0."""
    padded = _round_up(dim, align)
    if padded <= max_tile:
        return padded, padded
    return max_tile, _round_up(dim, max_tile)


# ----------------------------------------------------------------------------
# Pallas kernel 1: tiled matmul + bias (+ optional ReLU)  -- hot path of every conv
# ----------------------------------------------------------------------------
def _matmul_bias_kernel(a_ref, w_ref, b_ref, o_ref, acc_ref, *, relu):
    @pl.when(pl.program_id(2) == 0)
    def _():
        acc_ref[...] = jnp.zeros_like(acc_ref)

    acc_ref[...] += jnp.dot(a_ref[...], w_ref[...],
                            preferred_element_type=jnp.float32)

    @pl.when(pl.program_id(2) == pl.num_programs(2) - 1)
    def _():
        out = acc_ref[...] + b_ref[...]
        if relu:
            out = jnp.maximum(out, 0.0)
        o_ref[...] = out.astype(o_ref.dtype)


def matmul_bias(a, w, b, relu=False, tm_max=256, tn_max=256, tk_max=640):
    M, K = a.shape
    K2, N = w.shape
    assert K == K2
    tm, Mp = _pick_tile(M, 8, tm_max)
    tn, Np = _pick_tile(N, 128, tn_max)
    tk, Kp = _pick_tile(K, 128, tk_max)

    # bf16 operands feed the MXU at full rate; zero padding does not change the result.
    a_p = jnp.pad(a.astype(jnp.bfloat16), ((0, Mp - M), (0, Kp - K)))
    w_p = jnp.pad(w.astype(jnp.bfloat16), ((0, Kp - K), (0, Np - N)))
    b_p = jnp.pad(b.astype(jnp.float32), (0, Np - N)).reshape(1, Np)

    grid = (Mp // tm, Np // tn, Kp // tk)
    out = pl.pallas_call(
        functools.partial(_matmul_bias_kernel, relu=relu),
        grid=grid,
        in_specs=[
            pl.BlockSpec((tm, tk), lambda i, j, k: (i, k)),
            pl.BlockSpec((tk, tn), lambda i, j, k: (k, j)),
            pl.BlockSpec((1, tn), lambda i, j, k: (0, j)),
        ],
        out_specs=pl.BlockSpec((tm, tn), lambda i, j, k: (i, j)),
        out_shape=jax.ShapeDtypeStruct((Mp, Np), jnp.float32),
        scratch_shapes=[pltpu.VMEM((tm, tn), jnp.float32)],
        compiler_params=pltpu.CompilerParams(
            dimension_semantics=("parallel", "parallel", "arbitrary"),
            vmem_limit_bytes=_VMEM_LIMIT),
        cost_estimate=pl.CostEstimate(
            flops=2 * Mp * Np * Kp,
            transcendentals=0,
            bytes_accessed=Mp * Kp * 2 + Kp * Np * 2 + Mp * Np * 4 + Np * 4),
    )(a_p, w_p, b_p)
    return out[:M, :N]


# ----------------------------------------------------------------------------
# Pallas kernel 2: convex-combination upsample (softmax over 9 neighbours)
#   mask : [Tp, 9, 64]  (64 = 8x8 sub-pixel positions)
#   data : [Tp, 6, 9]   (channels = [2 flow (pre-scaled by 8), 4 info], 9 = 3x3 neighbours)
#   out  : [Tp, 384]    lane-dense, column = c*64 + (r*8 + cc)
# ----------------------------------------------------------------------------
def _upsample_kernel(mask_ref, data_ref, out_ref):
    m = mask_ref[...]                                   # [Tp, 9, 64]
    m = m - jnp.max(m, axis=1, keepdims=True)
    e = jnp.exp(m)
    soft = e / jnp.sum(e, axis=1, keepdims=True)        # softmax over the 9 neighbours
    d = data_ref[...]                                   # [Tp, 6, 9]
    # unrolled 9-term multiply-add (contraction length 9 is far too small for the MXU)
    acc = d[:, :, 0][:, :, None] * soft[:, 0, :][:, None, :]      # [Tp, 6, 64]
    for k in range(1, 9):
        acc = acc + d[:, :, k][:, :, None] * soft[:, k, :][:, None, :]
    out_ref[...] = acc.reshape(acc.shape[0], 6 * 64)    # lane-dense [Tp, 384] store


def pallas_upsample(mask, data, tp_max=512):
    P = mask.shape[0]
    tp, Pp = _pick_tile(P, 8, tp_max)
    mask_p = jnp.pad(mask, ((0, Pp - P), (0, 0), (0, 0)))
    data_p = jnp.pad(data, ((0, Pp - P), (0, 0), (0, 0)))
    out = pl.pallas_call(
        _upsample_kernel,
        grid=(Pp // tp,),
        in_specs=[
            pl.BlockSpec((tp, 9, 64), lambda i: (i, 0, 0)),
            pl.BlockSpec((tp, 6, 9), lambda i: (i, 0, 0)),
        ],
        out_specs=pl.BlockSpec((tp, 384), lambda i: (i, 0)),
        out_shape=jax.ShapeDtypeStruct((Pp, 384), jnp.float32),
        compiler_params=pltpu.CompilerParams(
            dimension_semantics=("parallel",),
            vmem_limit_bytes=_VMEM_LIMIT),
    )(mask_p, data_p)
    return out[:P]


# ----------------------------------------------------------------------------
# Pallas kernel 3: negative-log-likelihood ("nf") of the Laplace mixture
#   flow, gt : [2, L]   info : [4, L]   ->   nf : [2, L]     (L = N*H*W, lane-tiled)
# ----------------------------------------------------------------------------
def _nf_kernel(flow_ref, gt_ref, info_ref, nf_ref, *, var_max, var_min):
    diff = jnp.abs(gt_ref[...] - flow_ref[...])          # [2, TL]
    info = info_ref[...]                                 # [4, TL]
    d0 = diff[0:1]
    d1 = diff[1:2]
    w0 = info[0:1]
    w1 = info[1:2]
    b0 = jnp.clip(info[2:3], 0.0, var_max)
    b1 = jnp.clip(info[3:4], var_min, 0.0)
    e0 = jnp.exp(-b0)
    e1 = jnp.exp(-b1)
    ln2 = math.log(2.0)
    t0 = w0 - ln2 - b0
    t1 = w1 - ln2 - b1

    def lse2(a, b):
        # one exp + one log per call (instead of two exps)
        return jnp.maximum(a, b) + jnp.log(1.0 + jnp.exp(-jnp.abs(a - b)))

    lse_w = lse2(w0, w1)
    nf0 = lse_w - lse2(t0 - d0 * e0, t1 - d0 * e1)
    nf1 = lse_w - lse2(t0 - d1 * e0, t1 - d1 * e1)
    nf_ref[...] = jnp.concatenate([nf0, nf1], axis=0)    # single [2, TL] store


def nf_loss(flow_up, info_up, flow_gt, var_max, var_min, tl_max=2048):
    N, _, H, W = flow_up.shape
    L = N * H * W
    flow2 = jnp.transpose(flow_up, (1, 0, 2, 3)).reshape(2, L)
    gt2 = jnp.transpose(flow_gt, (1, 0, 2, 3)).reshape(2, L)
    info2 = jnp.transpose(info_up, (1, 0, 2, 3)).reshape(4, L)
    tl, Lp = _pick_tile(L, 128, tl_max)
    pad = ((0, 0), (0, Lp - L))
    flow2 = jnp.pad(flow2, pad)
    gt2 = jnp.pad(gt2, pad)
    info2 = jnp.pad(info2, pad)
    out = pl.pallas_call(
        functools.partial(_nf_kernel, var_max=var_max, var_min=var_min),
        grid=(Lp // tl,),
        in_specs=[
            pl.BlockSpec((2, tl), lambda i: (0, i)),
            pl.BlockSpec((2, tl), lambda i: (0, i)),
            pl.BlockSpec((4, tl), lambda i: (0, i)),
        ],
        out_specs=pl.BlockSpec((2, tl), lambda i: (0, i)),
        out_shape=jax.ShapeDtypeStruct((2, Lp), jnp.float32),
        compiler_params=pltpu.CompilerParams(
            dimension_semantics=("parallel",),
            vmem_limit_bytes=_VMEM_LIMIT),
    )(flow2, gt2, info2)
    nf = out[:, :L].reshape(2, N, H, W)
    return jnp.transpose(nf, (1, 0, 2, 3))


# ----------------------------------------------------------------------------
# Conv glue (im2col in plain JAX, tiled matmul in Pallas)
# TODO(synk): fuse im2col of the 3x3 convs into the matmul kernel (haloed NHWC tiles)
#             to avoid the 9x-expanded HBM slab; at 1/8 resolution this slab is small.
# ----------------------------------------------------------------------------
def _im2col(x_nhwc, kh, kw, stride, pad):
    N, H, W, C = x_nhwc.shape
    xp = jnp.pad(x_nhwc, ((0, 0), (pad, pad), (pad, pad), (0, 0)))
    Ho = (H + 2 * pad - kh) // stride + 1
    Wo = (W + 2 * pad - kw) // stride + 1
    cols = []
    for i in range(kh):
        for j in range(kw):
            cols.append(xp[:, i:i + stride * Ho:stride, j:j + stride * Wo:stride, :])
    patches = jnp.concatenate(cols, axis=-1)          # [N, Ho, Wo, kh*kw*C]
    return patches.reshape(N * Ho * Wo, kh * kw * C), (N, Ho, Wo)


def conv2d(x_nhwc, w, b, kh, kw, stride=1, pad=0, relu=False):
    patches, (N, Ho, Wo) = _im2col(x_nhwc, kh, kw, stride, pad)
    out = matmul_bias(patches, w, b, relu=relu)
    return out.reshape(N, Ho, Wo, -1)


# ----------------------------------------------------------------------------
# Parameters (deterministic, synthetic); weights stored bf16, biases f32
# ----------------------------------------------------------------------------
def _init_conv_params(key, kh, kw, cin, cout):
    k1, k2 = jax.random.split(key)
    fan_in = kh * kw * cin
    w = (jax.random.normal(k1, (fan_in, cout), jnp.float32)
         / jnp.sqrt(float(fan_in))).astype(jnp.bfloat16)
    b = 0.01 * jax.random.normal(k2, (cout,), jnp.float32)
    return w, b


def make_params(dim=32):
    key = jax.random.PRNGKey(0)
    ks = jax.random.split(key, 6)
    p = {}
    # TODO(synk): full ResNetFPN backbone definition not provided in the reference;
    # stand-in is a single 8x8 / stride-8 conv stem + ReLU producing the 1/8-res 2*dim feature map.
    p["cnet_stem"] = _init_conv_params(ks[0], 8, 8, 6, 2 * dim)
    p["init_conv"] = _init_conv_params(ks[1], 3, 3, 2 * dim, 2 * dim)
    p["flow_head_0"] = _init_conv_params(ks[2], 3, 3, dim, 2 * dim)
    p["flow_head_2"] = _init_conv_params(ks[3], 3, 3, 2 * dim, 6)
    p["upw_0"] = _init_conv_params(ks[4], 3, 3, dim, 2 * dim)
    p["upw_2"] = _init_conv_params(ks[5], 1, 1, 2 * dim, 64 * 9)
    return p


# ----------------------------------------------------------------------------
# upsample_data: [H/8, W/8] -> [H, W] convex combination (matches torch semantics)
# ----------------------------------------------------------------------------
def upsample_data(flow_8x, info_8x, mask):
    # flow_8x [N,H,W,2], info_8x [N,H,W,4], mask [N,H,W,576]  (NHWC, H/W at 1/8 res)
    N, H, W, _ = flow_8x.shape
    data = jnp.concatenate([8.0 * flow_8x, info_8x], axis=-1)      # [N,H,W,6]
    dp = jnp.pad(data, ((0, 0), (1, 1), (1, 1), (0, 0)))
    nbrs = []
    for i in range(3):
        for j in range(3):
            nbrs.append(dp[:, i:i + H, j:j + W, :])
    up = jnp.stack(nbrs, axis=-1)                                  # [N,H,W,6,9] (k=i*3+j, like F.unfold)
    mask9 = mask.reshape(N, H, W, 9, 64)                           # channel = k*64 + r*8 + c (like .view)
    P = N * H * W
    out = pallas_upsample(mask9.reshape(P, 9, 64), up.reshape(P, 6, 9))   # [P, 384], col = c*64+s
    out = out.reshape(N, H, W, 6, 8, 8)
    out = jnp.transpose(out, (0, 3, 1, 4, 2, 5)).reshape(N, 6, 8 * H, 8 * W)
    return out[:, :2], out[:, 2:]


# ----------------------------------------------------------------------------
# RAFT2 forward (args.iters = 0 path)
# ----------------------------------------------------------------------------
def raft2_forward(params, image1, image2, dim=32, var_max=10.0, var_min=-10.0, flow_gt=None):
    N, _, H, W = image1.shape
    # TODO(synk): InputPadder replicate-padding omitted; inputs must already be multiples of 8.
    assert H % 8 == 0 and W % 8 == 0
    if flow_gt is None:
        flow_gt = jnp.zeros((N, 2, H, W), jnp.float32)

    img1 = 2.0 * (image1 / 255.0) - 1.0
    img2 = 2.0 * (image2 / 255.0) - 1.0
    x = jnp.concatenate([img1, img2], axis=1)            # [N,6,H,W]
    x = jnp.transpose(x, (0, 2, 3, 1))                   # NHWC

    cnet = conv2d(x, *params["cnet_stem"], kh=8, kw=8, stride=8, pad=0, relu=True)   # [N,H/8,W/8,2*dim]
    cnet = conv2d(cnet, *params["init_conv"], kh=3, kw=3, pad=1)                     # init_conv (conv3x3)
    net = cnet[..., :dim]
    _context = cnet[..., dim:]   # only consumed by the iters>0 refinement loop

    fh = conv2d(net, *params["flow_head_0"], kh=3, kw=3, pad=1, relu=True)
    flow_update = conv2d(fh, *params["flow_head_2"], kh=3, kw=3, pad=1)              # [N,H/8,W/8,6]
    uw = conv2d(net, *params["upw_0"], kh=3, kw=3, pad=1, relu=True)
    weight_update = 0.25 * conv2d(uw, *params["upw_2"], kh=1, kw=1, pad=0)           # [N,H/8,W/8,576]

    flow_8x = flow_update[..., :2]
    info_8x = flow_update[..., 2:]
    flow_up, info_up = upsample_data(flow_8x, info_8x, weight_update)                # NCHW [N,2,H,W],[N,4,H,W]

    nf = nf_loss(flow_up, info_up, flow_gt, var_max=var_max, var_min=var_min)

    # TODO(synk): args.iters > 0 refinement loop (fnet / CorrBlock2 / BasicUpdateBlock2)
    # not implemented -- those submodule definitions were not provided in the reference.
    return {"final": flow_up, "flow": [flow_up], "info": [info_up], "nf": [nf]}


if __name__ == "__main__":
    key = jax.random.PRNGKey(0)
    k1, k2 = jax.random.split(key)
    N, C, H, W = 2, 3, 16, 16
    image1 = jax.random.uniform(k1, (N, C, H, W), jnp.float32, 0.0, 255.0)
    image2 = jax.random.uniform(k2, (N, C, H, W), jnp.float32, 0.0, 255.0)

    params = make_params(dim=32)
    out = raft2_forward(params, image1, image2, dim=32)

    jax.block_until_ready(out["final"])
    jax.block_until_ready(out["nf"][0])
    assert out["final"].shape == (N, 2, H, W)
    assert out["info"][0].shape == (N, 4, H, W)
    assert out["nf"][0].shape == (N, 2, H, W)
    print("KERNEL_OK")
</pallas_src>

<mosaic_0001>
module attributes {stable_mosaic.version = 11 : i64} {
  func.func @_matmul_bias_kernel(%arg0: i32, %arg1: i32, %arg2: i32, %arg3: memref<8x384xbf16, #tpu.memory_space<vmem>>, %arg4: memref<384x128xbf16, #tpu.memory_space<vmem>>, %arg5: memref<1x128xf32, #tpu.memory_space<vmem>>, %arg6: memref<8x128xf32, #tpu.memory_space<vmem>>, %arg7: memref<8x128xf32, #tpu.memory_space<vmem>>) attributes {dimension_semantics = [#tpu.dimension_semantics<parallel>, #tpu.dimension_semantics<parallel>, #tpu.dimension_semantics<arbitrary>], iteration_bounds = array<i64: 1, 1, 1>, scalar_prefetch = 0 : i64, scratch_operands = 1 : i64, tpu.core_type = #tpu.core_type<tc>, window_params = [{transform_indices = @transform_0, window_bounds = array<i64: 8, 384>}, {transform_indices = @transform_1, window_bounds = array<i64: 384, 128>}, {transform_indices = @transform_2, window_bounds = array<i64: 1, 128>}, {transform_indices = @transform_3, window_bounds = array<i64: 8, 128>}]} {
    %c0_i32 = arith.constant 0 : i32
    %0 = arith.cmpi eq, %arg2, %c0_i32 : i32
    %1 = arith.extui %0 : i1 to i32
    %c0_i32_0 = arith.constant 0 : i32
    %2 = arith.cmpi ne, %1, %c0_i32_0 : i32
    scf.if %2 {
      %cst_10 = arith.constant 0.000000e+00 : f32
      %12 = vector.broadcast %cst_10 : f32 to vector<8x128xf32>
      %c0_11 = arith.constant 0 : index
      %c0_12 = arith.constant 0 : index
      %13 = vector.load %arg7[%c0_11, %c0_12] : memref<8x128xf32, #tpu.memory_space<vmem>>, vector<8x128xf32>
      tpu.vector_store %arg7[%c0_11, %c0_12], %12 {strides = array<i32>} : memref<8x128xf32, #tpu.memory_space<vmem>>, vector<8x128xf32>,
    } else {
    }
    %c0 = arith.constant 0 : index
    %c0_1 = arith.constant 0 : index
    %3 = vector.load %arg7[%c0, %c0_1] : memref<8x128xf32, #tpu.memory_space<vmem>>, vector<8x128xf32>
    %c0_2 = arith.constant 0 : index
    %c0_3 = arith.constant 0 : index
    %4 = vector.load %arg3[%c0_2, %c0_3] : memref<8x384xbf16, #tpu.memory_space<vmem>>, vector<8x384xbf16>
    %c0_4 = arith.constant 0 : index
    %c0_5 = arith.constant 0 : index
    %5 = vector.load %arg4[%c0_4, %c0_5] : memref<384x128xbf16, #tpu.memory_space<vmem>>, vector<384x128xbf16>
    %cst = arith.constant dense<0.000000e+00> : vector<8x128xf32>
    %6 = tpu.matmul %4, %5, %cst {dimension_numbers = #tpu.dot_dimension_numbers<[1], [0], [0], [1], [0, 0, 1, 1], [], []>} : vector<8x384xbf16>, vector<384x128xbf16>, vector<8x128xf32> -> vector<8x128xf32>
    %7 = arith.addf %3, %6 : vector<8x128xf32>
    %c0_6 = arith.constant 0 : index
    %c0_7 = arith.constant 0 : index
    %8 = vector.load %arg7[%c0_6, %c0_7] : memref<8x128xf32, #tpu.memory_space<vmem>>, vector<8x128xf32>
    tpu.vector_store %arg7[%c0_6, %c0_7], %7 {strides = array<i32>} : memref<8x128xf32, #tpu.memory_space<vmem>>, vector<8x128xf32>,
    %c0_i32_8 = arith.constant 0 : i32
    %9 = arith.cmpi eq, %arg2, %c0_i32_8 : i32
    %10 = arith.extui %9 : i1 to i32
    %c0_i32_9 = arith.constant 0 : i32
    %11 = arith.cmpi ne, %10, %c0_i32_9 : i32
    scf.if %11 {
      %c0_10 = arith.constant 0 : index
      %c0_11 = arith.constant 0 : index
      %12 = vector.load %arg7[%c0_10, %c0_11] : memref<8x128xf32, #tpu.memory_space<vmem>>, vector<8x128xf32>
      %c0_12 = arith.constant 0 : index
      %c0_13 = arith.constant 0 : index
      %13 = vector.load %arg5[%c0_12, %c0_13] : memref<1x128xf32, #tpu.memory_space<vmem>>, vector<1x128xf32>
      %14 = vector.broadcast %13 : vector<1x128xf32> to vector<8x128xf32>
      %15 = arith.addf %12, %14 : vector<8x128xf32>
      %cst_14 = arith.constant 0.000000e+00 : f32
      %16 = vector.broadcast %cst_14 : f32 to vector<8x128xf32>
      %17 = arith.maximumf %15, %16 : vector<8x128xf32>
      %c0_15 = arith.constant 0 : index
      %c0_16 = arith.constant 0 : index
      %18 = vector.load %arg6[%c0_15, %c0_16] : memref<8x128xf32, #tpu.memory_space<vmem>>, vector<8x128xf32>
      tpu.vector_store %arg6[%c0_15, %c0_16], %17 {strides = array<i32>} : memref<8x128xf32, #tpu.memory_space<vmem>>, vector<8x128xf32>,
    } else {
    }
    return
  }
  func.func @transform_0(%arg0: i32, %arg1: i32, %arg2: i32) -> (i32, i32) {
    %c0_i32 = arith.constant 0 : i32
    return %arg0, %arg2 : i32, i32
  }
  func.func @transform_1(%arg0: i32, %arg1: i32, %arg2: i32) -> (i32, i32) {
    %c0_i32 = arith.constant 0 : i32
    return %arg2, %arg1 : i32, i32
  }
  func.func @transform_2(%arg0: i32, %arg1: i32, %arg2: i32) -> (i32, i32) {
    %c0_i32 = arith.constant 0 : i32
    %c0_i32_0 = arith.constant 0 : i32
    return %c0_i32, %arg1 : i32, i32
  }
  func.func @transform_3(%arg0: i32, %arg1: i32, %arg2: i32) -> (i32, i32) {
    %c0_i32 = arith.constant 0 : i32
    return %arg0, %arg1 : i32, i32
  }
}

</mosaic_0001>

<bundles_post_ra>
// kernel: tpu_custom_call.1
= control target key start
LH: loop header
LB: loop body
LE: loop exit
PB: predicated region body
PF: predicated region fallthrough
CT: control target
= control target key end

     0   :  { %8 = vsyncpa [#allocation4], 0  ;;  %s583_s0 = inlined_call_operand.hbm [shape: bf16[8,384], index: 0, kind: input, shape index: {}]   ;;  %s584_s1 = inlined_call_operand.hbm [shape: bf16[384,128], index: 1, kind: input, shape index: {}]   ;;  %s585_s2 = inlined_call_operand.vmem [shape: f32[1,128], index: 2, kind: input, shape index: {}]   ;;  %s586_s3 = inlined_call_operand.hbm [shape: f32[8,128], index: 3, kind: output, shape index: {}]  }
   0x1   :  { %9 = vsyncpa [#allocation7], 0 }
   0x2   :  { %10 = vsyncpa [#allocation5], 0  ;;  %s544_s12 = smov [#allocation3]   ;;  %s545_s14 = smov [#allocation6]  }
   0x3   :  { %s17_s13 = sshll.u32 %s544_s12, 4  ;;  %s26_s15 = sshll.u32 %s545_s14, 4  ;;  %s18_s13 = int_to_ptr.vmem [resolvable:$true] %s17_s13  ;;  %s27_s15 = int_to_ptr.vmem [resolvable:$true] %s26_s15 }
   0x4   :  { %s486_s16 = scalar_lea.vmem %s18_s13, 192  ;;  %p491_p1 = scmp.lt.s32.totalorder %s18_s13, %s18_s13 }
   0x5   :  { %p487_p0 = scmp.ne.s32.totalorder %s18_s13, %s486_s16  ;;  %p492_p2 = scmp.lt.s32.totalorder %s486_s16, %s486_s16 }
   0x7   :  { %p493_p3 = por %p492_p2, %p491_p1 }
   0x9   :  { %p494_p4 = pnand %p493_p3, %p487_p0 }
   0xb   :  { %497 = shalt.err (!%p494_p4)
}
   0xc   :  { %20 = dma.hbm_to_vmem [thread:$0]  %s583_s0, 192, %s18_s13, [#allocation4]  }
   0xd   :  { %s506_s19 = scalar_lea.vmem %s27_s15, 3072  ;;  %p511_p6 = scmp.lt.s32.totalorder %s27_s15, %s27_s15 }
   0xe   :  { %p507_p5 = scmp.ne.s32.totalorder %s27_s15, %s506_s19  ;;  %p512_p7 = scmp.lt.s32.totalorder %s506_s19, %s506_s19 }
  0x10   :  { %p513_p8 = por %p512_p7, %p511_p6 }
  0x12   :  { %p514_p9 = pnand %p513_p8, %p507_p5 }
  0x14   :  { %517 = shalt.err (!%p514_p9)
}
  0x15   :  { %s546_s20 = smov 64   ;;  %s547_s21 = smov 4  }
  0x16   :  { %32 = dma.hbm_to_vmem [thread:$0]  %s584_s1, 3072, %s27_s15, [#allocation7], %s546_s20, %s546_s20, %s547_s21  }
  0x17   :  { %538 = dma.done.wait [#allocation4], 192  }
  0x18   :  { %539 = vsyncadd [#allocation4], 4294967104 }
  0x19   :  { %540 = dma.done.wait [#allocation7], 3072  }
  0x1a   :  { %541 = vsyncadd [#allocation7], 4294964224  ;;  %v548_v0 = vmov 0.0   ;;  %vm549_vm0 = vmmov 0   ;;  %v451_v1 = vld [vmem:[#allocation6 + $0x78] sm:$0xff]   ;;  %v454_v4 = vld [vmem:[#allocation6 + $0x70] sm:$0xff]  }
  0x1b   :  { %424 = vmatprep.subr.bf16.mxu1 %v548_v0  ;;  %440 = vmatprep.mubr.msk.bf16.mxu1 %vm549_vm0, %v548_v0  ;;  %v452_v2 = vld [vmem:[#allocation6 + $0xb8] sm:$0xff]   ;;  %v455_v5 = vld [vmem:[#allocation6 + $0xb0] sm:$0xff]   ;;  %v457_v7 = vld [vmem:[#allocation6 + $0x68] sm:$0xff]   ;;  %s550_s24 = smov [#allocation8]  }
  0x1c   :  { %393 = vmatprep.subr.bf16.mxu0 %v451_v1  ;;  %v453_v3 = vld [vmem:[#allocation6 + $0x38] sm:$0xff]   ;;  %425 = vmatpush3.bf16.msra.mxu1 %v452_v2  ;;  %v456_v6 = vld [vmem:[#allocation6 + $0x30] sm:$0xff]   ;;  %v458_v8 = vld [vmem:[#allocation6 + $0xa8] sm:$0xff]   ;;  %s355_s25 = sshll.u32 %s550_s24, 4  ;;  %s356_s25 = int_to_ptr.vmem [resolvable:$true] %s355_s25 }
  0x1d   :  { %394 = vmatpush3.bf16.msra.mxu0 %v453_v3  ;;  %426 = vmatprep.subr.bf16.mxu1 %v548_v0  ;;  %v459_v9 = vld [vmem:[#allocation6 + $0x28] sm:$0xff]   ;;  %v460_v10 = vld [vmem:[#allocation6 + $0x60] sm:$0xff]   ;;  %v463_v13 = vld [vmem:[#allocation6 + $0x58] sm:$0xff]   ;;  %s518_s26 = scalar_lea.vmem %s356_s25, 128  ;;  %p523_p11 = scmp.lt.s32.totalorder %s356_s25, %s356_s25 }
  0x1e   :  { %395 = vmatprep.subr.bf16.mxu0 %v454_v4  ;;  %v461_v11 = vld [vmem:[#allocation6 + $0xa0] sm:$0xff]   ;;  %v464_v14 = vld [vmem:[#allocation6 + $0x98] sm:$0xff]   ;;  %v466_v16 = vld [vmem:[#allocation6 + $0x50] sm:$0xff]   ;;  %p519_p10 = scmp.ne.s32.totalorder %s356_s25, %s518_s26  ;;  %p524_p12 = scmp.lt.s32.totalorder %s518_s26, %s518_s26 }
  0x1f   :  { %v462_v12 = vld [vmem:[#allocation6 + $0x20] sm:$0xff]   ;;  %v465_v15 = vld [vmem:[#allocation6 + $0x18] sm:$0xff]   ;;  %v467_v17 = vld [vmem:[#allocation6 + $0x90] sm:$0xff]  }
  0x20   :  { %427 = vmatpush3.bf16.msra.mxu1 %v455_v5  ;;  %v468_v18 = vld [vmem:[#allocation6 + $0x10] sm:$0xff]   ;;  %v469_v19 = vld [vmem:[#allocation6 + $0x48] sm:$0xff]   ;;  %v472_v23 = vld [vmem:[#allocation6 + $0x40] sm:$0xff]   ;;  %p525_p13 = por %p524_p12, %p523_p11 }
  0x21   :  { %396 = vmatpush3.bf16.msra.mxu0 %v456_v6  ;;  %428 = vmatprep.subr.bf16.mxu1 %v548_v0  ;;  %v470_v20 = vld [vmem:[#allocation6 + $0x88] sm:$0xff]   ;;  %v48_v22 = vld [vmem:[#allocation3] sm:$0xff]  ;;  %v473_v25 = vld [vmem:[#allocation6 + $0x80] sm:$0xff]  }
  0x22   :  { %397 = vmatprep.subr.bf16.mxu0 %v457_v7  ;;  %v471_v21 = vld [vmem:[#allocation6 + $0x8] sm:$0xff]   ;;  %v366_v24 = vcombine.high %v48_v22, %v48_v22  ;;  %v474_v26 = vld [vmem:[#allocation6] sm:$0xff]   ;;  %v477_v27 = vld [vmem:[#allocation3 + $0x8] ss:$0 sps:$4 sm:$0xff]   ;;  %v365_v28 = vcombine.low %v48_v22, %v48_v22  ;;  %p526_p0 = pnand %p525_p13, %p519_p10 }
  0x23   :  { %v392_v36 = vld [vmem:[%s585_s2] ss:$0 sm:$0xff] }
  0x24   :  { %429 = vmatpush3.bf16.msra.mxu1 %v458_v8  ;;  %285 = vmatprep.mubr.bf16.mxu0 %v366_v24 }
  0x25   :  { %398 = vmatpush3.bf16.msra.mxu0 %v459_v9  ;;  %430 = vmatprep.subr.bf16.mxu1 %v548_v0 }
  0x26   :  { %399 = vmatprep.subr.bf16.mxu0 %v460_v10 }
  0x28   :  { %431 = vmatpush3.bf16.msra.mxu1 %v461_v11 }
  0x29   :  { %400 = vmatpush3.bf16.msra.mxu0 %v462_v12  ;;  %432 = vmatprep.subr.bf16.mxu1 %v548_v0 }
  0x2a   :  { %401 = vmatprep.subr.bf16.mxu0 %v463_v13 }
  0x2c   :  { %433 = vmatpush3.bf16.msra.mxu1 %v464_v14 }
  0x2d   :  { %402 = vmatpush3.bf16.msra.mxu0 %v465_v15  ;;  %434 = vmatprep.subr.bf16.mxu1 %v548_v0 }
  0x2e   :  { %403 = vmatprep.subr.bf16.mxu0 %v466_v16 }
  0x30   :  { %435 = vmatpush3.bf16.msra.mxu1 %v467_v17 }
  0x31   :  { %404 = vmatpush3.bf16.msra.mxu0 %v468_v18  ;;  %436 = vmatprep.subr.bf16.mxu1 %v548_v0 }
  0x32   :  { %405 = vmatprep.subr.bf16.mxu0 %v469_v19 }
  0x34   :  { %437 = vmatpush3.bf16.msra.mxu1 %v470_v20 }
  0x35   :  { %406 = vmatpush3.bf16.msra.mxu0 %v471_v21  ;;  %438 = vmatprep.subr.bf16.mxu1 %v548_v0 }
  0x36   :  { %407 = vmatprep.subr.bf16.mxu0 %v472_v23 }
  0x38   :  { %439 = vmatpush3.bf16.msra.mxu1 %v473_v25 }
  0x39   :  { %408 = vmatpush3.bf16.msra.mxu0 %v474_v26 }
  0x3b   :  { %441 = vmatmul.mubr.bf16.vlgmr.msra.gmra.mxu1 %v477_v27 }
  0x3c   :  { %286 = vmatmul.mubr.bf16.vlgmr.msra.gmra.mxu0 %v365_v28 }
  0xfb   :  { %v327_v29 = vpop.f32.mrf.mxu1 }
  0xfc   :  { %v409_v30 = vpop.f32.mrf.mxu0 }
  0xfd   :  { %v442_v31 = vpop.f32.mrf.mxu1 }
  0xfe   :  { %v410_v32 = vpop.f32.mrf.mxu0 }
  0xff   :  { %v411_v33 = vadd.f32 %v410_v32, %v409_v30  ;;  %v330_v34 = vpop.f32.mrf.mxu1 }
 0x100   :  { %v412_v35 = vpop.f32.mrf.mxu0 }
 0x101   :  { %v328_v37 = vadd.f32 %v411_v33, %v327_v29  ;;  %v443_v38 = vpop.f32.mrf.mxu1 }
 0x102   :  { %v413_v39 = vpop.f32.mrf.mxu0 }
 0x103   :  { %v346_v40 = vadd.f32 %v392_v36, %v328_v37 }
 0x105   :  { %v347_v41 = vmax.f32 %v346_v40, 0.0 }
 0x107   :  { %348 = vst [vmem:[#allocation8] sm:$0xff] %v347_v41 }
 0x108   :  { %529 = shalt.err (!%p526_p0)
}
 0x109   :  { %358 = dma.vmem_to_hbm [thread:$0]  %s356_s25, 128, %s586_s3, [#allocation5]  }
 0x10a   :  { %542 = dma.done.wait [#allocation5], 128  }
 0x10b   :  { %543 = vsyncadd [#allocation5], 4294967168 }
 0x10c   :  { %362 = vsyncpa [#allocation4], 1 }
 0x10d   :  { %363 = vsyncpa [#allocation7], 1 }
 0x10e   :  { %364 = vsyncpa [#allocation5], 1 }

</bundles_post_ra>
